<compile_context>
chip_gen: v6e
topology: v6e:2x2x1
jax: 0.10.0
libtpu: 0.0.40
codegen_flags: <defaults>
</compile_context>

<pallas_src>
import jax
import jax.numpy as jnp
from jax.experimental import pallas as pl
from jax.experimental.pallas import tpu as pltpu


_LANE = 128
_RESIDENT_WEIGHT_BUDGET = 12 << 20   # bytes of (K_pad, N_pad) weight kept VMEM-resident
_DEFAULT_SCOPED_VMEM = 32 << 20      # platform default scoped VMEM
_VMEM_SOFT_CAP = 44 << 20            # stay well under v7x's 64 MiB physical VMEM


def _round_up(a: int, b: int) -> int:
    return -(-a // b) * b


def _sublane(dtype) -> int:
    # Minimum sublane multiple for the packed-row layout of this dtype.
    return {4: 8, 2: 16, 1: 32}.get(jnp.dtype(dtype).itemsize, 8)


# --------------------------------------------------------------------------
# Kernels
# --------------------------------------------------------------------------
def _linear_resident_kernel(x_ref, w_ref, o_ref):
    """Weight-resident path: w_ref is the full (K_pad, N_pad) weight in VMEM.

    The weight BlockSpec's index_map is constant, so the tile is fetched once
    and revisited across the M grid.  Single-shot MXU matmul per M tile: no
    accumulator scratch, no pl.when branches.
    """
    o_ref[...] = jnp.dot(
        x_ref[...], w_ref[...], preferred_element_type=jnp.float32
    ).astype(o_ref.dtype)


def _linear_tiled_kernel(x_ref, w_ref, o_ref, acc_ref):
    """General path: (tm, tn) output tile accumulated over the K grid axis."""
    @pl.when(pl.program_id(2) == 0)
    def _():
        acc_ref[...] = jnp.zeros_like(acc_ref)

    acc_ref[...] += jnp.dot(
        x_ref[...], w_ref[...], preferred_element_type=jnp.float32
    )

    @pl.when(pl.program_id(2) == pl.num_programs(2) - 1)
    def _():
        o_ref[...] = acc_ref[...].astype(o_ref.dtype)


# --------------------------------------------------------------------------
# Wrapper
# --------------------------------------------------------------------------
@jax.jit
def xtr_linear(x, weight):
    """y = x @ weight.T  (torch.nn.Linear with bias=False).

    x:      (..., in_features)
    weight: (out_features, in_features)  -- PyTorch convention.
    """
    *lead, K = x.shape
    N, K_w = weight.shape
    if K != K_w:
        raise ValueError(f"in_features mismatch: x has {K}, weight has {K_w}")

    x2d = x.reshape(-1, K)
    M = x2d.shape[0]
    out_dtype = x.dtype

    sub_x = _sublane(x.dtype)
    xb = jnp.dtype(x.dtype).itemsize
    wb = jnp.dtype(weight.dtype).itemsize
    ob = jnp.dtype(out_dtype).itemsize

    # One-time canonical [K, N] feed for the MXU (constant parameter; in a real
    # model do this once at load time instead of per call).
    w_kn = weight.T  # (K, N)

    N_pad = _round_up(N, _LANE)

    # ---------------- weight-resident path (small/medium weight) ----------------
    K_pad = _round_up(K, _LANE)
    w_res_bytes = K_pad * N_pad * wb
    if w_res_bytes <= _RESIDENT_WEIGHT_BUDGET:
        tm = min(_round_up(M, sub_x), 512)

        def footprint(tm_):
            return (2 * tm_ * K_pad * xb      # double-buffered activation tiles
                    + 2 * K_pad * N_pad * wb  # resident weight (conservative x2)
                    + 2 * tm_ * N_pad * ob)   # double-buffered output tiles

        while footprint(tm) > _VMEM_SOFT_CAP and tm > sub_x:
            tm = max(sub_x, _round_up(tm // 2, sub_x))

        if footprint(tm) <= _VMEM_SOFT_CAP:
            M_pad = _round_up(M, tm)
            # v7x megacore: ensure >= 2 blocks along the parallel M axis when possible.
            if M_pad // tm == 1 and tm >= 2 * sub_x:
                tm = _round_up((M + 1) // 2, sub_x)
                M_pad = _round_up(M, tm)

            x_p = x2d
            if (M_pad, K_pad) != (M, K):
                x_p = jnp.pad(x2d, ((0, M_pad - M), (0, K_pad - K)))
            w_p = w_kn
            if (K_pad, N_pad) != (K, N):
                w_p = jnp.pad(w_kn, ((0, K_pad - K), (0, N_pad - N)))

            fp = footprint(tm)
            params = dict(dimension_semantics=("parallel",))
            if fp > _DEFAULT_SCOPED_VMEM:
                params["vmem_limit_bytes"] = int(min(fp + (4 << 20), 48 << 20))

            out2d = pl.pallas_call(
                _linear_resident_kernel,
                out_shape=jax.ShapeDtypeStruct((M_pad, N_pad), out_dtype),
                grid_spec=pltpu.PrefetchScalarGridSpec(
                    num_scalar_prefetch=0,
                    grid=(M_pad // tm,),
                    in_specs=[
                        pl.BlockSpec((tm, K_pad), lambda i: (i, 0)),
                        pl.BlockSpec((K_pad, N_pad), lambda i: (0, 0)),
                    ],
                    out_specs=pl.BlockSpec((tm, N_pad), lambda i: (i, 0)),
                ),
                compiler_params=pltpu.CompilerParams(**params),
            )(x_p, w_p)

            if (M_pad, N_pad) != (M, N):
                out2d = out2d[:M, :N]
            return out2d.reshape(*lead, N)

    # ---------------- general tiled path (large weight) ----------------
    tm = min(_round_up(M, sub_x), 512)
    tn = min(N_pad, 512)
    K_128 = _round_up(K, _LANE)
    tk = K_128 if K_128 <= 2048 else 1024   # collapse small K; big DMAs for large K

    M_pad = _round_up(M, tm)
    N_pad_t = _round_up(N, tn)
    K_pad_t = _round_up(K, tk)

    x_p = x2d
    if (M_pad, K_pad_t) != (M, K):
        x_p = jnp.pad(x2d, ((0, M_pad - M), (0, K_pad_t - K)))
    w_p = w_kn
    if (K_pad_t, N_pad_t) != (K, N):
        w_p = jnp.pad(w_kn, ((0, K_pad_t - K), (0, N_pad_t - N)))

    fp = (2 * tm * tk * xb + 2 * tk * tn * wb + 2 * tm * tn * ob + tm * tn * 4)
    params = dict(dimension_semantics=("parallel", "parallel", "arbitrary"))
    if fp > _DEFAULT_SCOPED_VMEM:
        params["vmem_limit_bytes"] = int(min(fp + (4 << 20), 48 << 20))

    out2d = pl.pallas_call(
        _linear_tiled_kernel,
        out_shape=jax.ShapeDtypeStruct((M_pad, N_pad_t), out_dtype),
        grid_spec=pltpu.PrefetchScalarGridSpec(
            num_scalar_prefetch=0,
            grid=(M_pad // tm, N_pad_t // tn, K_pad_t // tk),
            in_specs=[
                pl.BlockSpec((tm, tk), lambda i, j, k: (i, k)),
                pl.BlockSpec((tk, tn), lambda i, j, k: (k, j)),
            ],
            out_specs=pl.BlockSpec((tm, tn), lambda i, j, k: (i, j)),
            scratch_shapes=[pltpu.VMEM((tm, tn), jnp.float32)],
        ),
        compiler_params=pltpu.CompilerParams(**params),
    )(x_p, w_p)

    if (M_pad, N_pad_t) != (M, N):
        out2d = out2d[:M, :N]
    return out2d.reshape(*lead, N)


if __name__ == "__main__":
    # Shapes consistent with the module: in_features=768, out_features=128,
    # input (batch=2, seq=8, 768).
    in_features, out_features = 768, 128
    batch, seq = 2, 8

    key = jax.random.PRNGKey(0)
    k_x, k_w = jax.random.split(key)

    x = jax.random.normal(k_x, (batch, seq, in_features), dtype=jnp.float32)
    # Deterministic synthetic weight (matches nn.Linear weight shape (out, in)).
    weight = (
        jax.random.uniform(k_w, (out_features, in_features), dtype=jnp.float32)
        - 0.5
    ) * (2.0 / jnp.sqrt(in_features))

    y = xtr_linear(x, weight)
    y = jax.block_until_ready(y)

    # Reference check against plain JAX at highest precision. A modest tolerance
    # covers the default (reduced-precision) MXU lowering of f32 matmuls.
    y_ref = jnp.einsum(
        "bsk,nk->bsn", x, weight, precision=jax.lax.Precision.HIGHEST
    )
    assert y.shape == (batch, seq, out_features)
    assert jnp.allclose(y, y_ref, atol=1e-2, rtol=1e-2)

    print("KERNEL_OK")
</pallas_src>

<mosaic_0001>
module attributes {stable_mosaic.version = 11 : i64} {
  func.func @_linear_resident_kernel(%arg0: i32, %arg1: memref<8x768xf32, #tpu.memory_space<vmem>>, %arg2: memref<768x128xf32, #tpu.memory_space<vmem>>, %arg3: memref<8x128xf32, #tpu.memory_space<vmem>>) attributes {dimension_semantics = [#tpu.dimension_semantics<parallel>], iteration_bounds = array<i64: 2>, scalar_prefetch = 0 : i64, scratch_operands = 0 : i64, tpu.core_type = #tpu.core_type<tc>, window_params = [{transform_indices = @transform_0, window_bounds = array<i64: 8, 768>}, {pipeline_mode = #tpu.pipeline_mode<synchronous>, transform_indices = @transform_1, window_bounds = array<i64: 768, 128>}, {transform_indices = @transform_2, window_bounds = array<i64: 8, 128>}]} {
    %c0 = arith.constant 0 : index
    %c0_0 = arith.constant 0 : index
    %0 = vector.load %arg1[%c0, %c0_0] : memref<8x768xf32, #tpu.memory_space<vmem>>, vector<8x768xf32>
    %c0_1 = arith.constant 0 : index
    %c0_2 = arith.constant 0 : index
    %1 = vector.load %arg2[%c0_1, %c0_2] : memref<768x128xf32, #tpu.memory_space<vmem>>, vector<768x128xf32>
    %cst = arith.constant dense<0.000000e+00> : vector<8x128xf32>
    %2 = tpu.matmul %0, %1, %cst {dimension_numbers = #tpu.dot_dimension_numbers<[1], [0], [0], [1], [0, 0, 1, 1], [], []>} : vector<8x768xf32>, vector<768x128xf32>, vector<8x128xf32> -> vector<8x128xf32>
    %c0_3 = arith.constant 0 : index
    %c0_4 = arith.constant 0 : index
    %3 = vector.load %arg3[%c0_3, %c0_4] : memref<8x128xf32, #tpu.memory_space<vmem>>, vector<8x128xf32>
    tpu.vector_store %arg3[%c0_3, %c0_4], %2 {strides = array<i32>} : memref<8x128xf32, #tpu.memory_space<vmem>>, vector<8x128xf32>,
    return
  }
  func.func @transform_0(%arg0: i32) -> (i32, i32) {
    %c0_i32 = arith.constant 0 : i32
    %c0_i32_0 = arith.constant 0 : i32
    return %arg0, %c0_i32 : i32, i32
  }
  func.func @transform_1(%arg0: i32) -> (i32, i32) {
    %c0_i32 = arith.constant 0 : i32
    %c0_i32_0 = arith.constant 0 : i32
    %c0_i32_1 = arith.constant 0 : i32
    return %c0_i32, %c0_i32_0 : i32, i32
  }
  func.func @transform_2(%arg0: i32) -> (i32, i32) {
    %c0_i32 = arith.constant 0 : i32
    %c0_i32_0 = arith.constant 0 : i32
    return %arg0, %c0_i32 : i32, i32
  }
}

</mosaic_0001>

<bundles_post_ra>
// kernel: xtr_linear.1
= control target key start
LH: loop header
LB: loop body
LE: loop exit
PB: predicated region body
PF: predicated region fallthrough
CT: control target
= control target key end

     0   :  { %7 = vsyncpa [#allocation3], 0  ;;  %s1149_s0 = inlined_call_operand.vmem [shape: f32[16,768], index: 0, kind: input, shape index: {}]   ;;  %s1150_s1 = inlined_call_operand.vmem [shape: f32[768,128], index: 1, kind: input, shape index: {}]   ;;  %s1151_s2 = inlined_call_operand.hbm [shape: f32[16,128], index: 2, kind: output, shape index: {}]  }
   0x1   :  { %9 = vsyncpa [#allocation3 + $0x1], 0  ;;  %s761_s9 = smov 0   ;;  %s763_s10 = smov 0  }
   0x2   :  { %s765_s11 = smov 0   ;;  %s767_s12 = smov 0  }
   0x3 LB: > { %s782_s13 = sadd.s32 4294967295, %s743_s12   ;;  %s528_s14 = sadd.s32 4294967294, %s743_s12   ;;  %s743_s12 = sphi %s767_s12, %s1157_s12   ;;  %s739_s11 = sphi %s765_s11, %s1156_s11   ;;  %s735_s10 = sphi %s763_s10, %s1155_s10   ;;  %s731_s9 = sphi %s761_s9, %s1154_s9  }
   0x4   : > { %s786_s15 = sadd.s32 1, %s743_s12   ;;  %s69_s16 = sadd.s32 1, %s739_s11 }
   0x5   : > { %s66_s17 = ssub.s32 %s743_s12, %s786_s15  ;;  %p79_p0 = scmp.ne.s32.totalorder %s739_s11, %s735_s10 }
   0x6   : > { %p67_p1 = scmp.eq.s32.totalorder %s66_s17, 0  ;;  %p80_p2 = scmp.eq.s32.totalorder %s782_s13, 1 }
   0x7   : > { %p85_p3 = scmp.ne.s32.totalorder %s735_s10, %s731_s9  ;;  %p86_p4 = scmp.eq.s32.totalorder %s528_s14, 1 }
   0x8   : > { %s797_s18 = scalar_select %p67_p1, %s739_s11, %s69_s16  }
   0x9   : > { %p799_p5 = por %p80_p2, %p79_p0  ;;  %p803_p6 = por %p86_p4, %p85_p3 }
   0xa   : > { %p531_p7 = scmp.ge.s32.totalorder %s743_s12, 1  ;;  %p115_p8 = scmp.lt.s32.totalorder %s743_s12, 3 }
   0xc   : > { %p116_p9 = pnand %p531_p7, %p115_p8 }
   0xd   : > { %p137_p10 = scmp.lt.s32.totalorder (!%p116_p9), %s782_s13, 1  ;;  %s134_s6 = sand.u32 (!%p116_p9), 1, %s735_s10  }
   0xe   : > { %119 = sbr.rel (%p116_p9) target bundleno = 299 (0x12b), region = 28  ;;  %s532_s7 = sshll.u32 (!%p116_p9), %s134_s6, 3 }
   0xf   : > { %s136_s8 = scalar_lea.vmem (!%p116_p9), [#allocation2], %s532_s7  ;;  %s456_s17 = scalar_lea.sflag (!%p116_p9), [#allocation3], %s134_s6 }
  0x10   : > { %s745_s22 = smov (!%p116_p9), [#allocation2]  }
  0x11   : > { %s687_s23 = sshll.u32 (!%p116_p9), %s745_s22, 4  ;;  %s688_s23 = int_to_ptr.vmem [resolvable:$false] %s687_s23 }
  0x13   : > { %v179_v0 = vld [vmem:[%s1150_s1 + $0xf8] sm:$0xff]  ;;  %v178_v4 = vld [vmem:[%s1150_s1 + $0xf0] sm:$0xff]  ;;  %v177_v8 = vld [vmem:[%s1150_s1 + $0xe8] sm:$0xff]  ;;  %s939_s29 = scalar_select %p137_p10, %s782_s13, 1 }
  0x14   : > { %v211_v1 = vld [vmem:[%s1150_s1 + $0x1f8] sm:$0xff]  ;;  %538 = vmatprep.subr.mxu0 %v179_v0  ;;  %v210_v5 = vld [vmem:[%s1150_s1 + $0x1f0] sm:$0xff]  ;;  %v209_v9 = vld [vmem:[%s1150_s1 + $0x1e8] sm:$0xff] }
  0x15   : > { %v163_v2 = vld [vmem:[%s1150_s1 + $0x78] sm:$0xff]  ;;  %573 = vmatprep.subr.mxu1 %v211_v1  ;;  %v162_v6 = vld [vmem:[%s1150_s1 + $0x70] sm:$0xff]  ;;  %v161_v10 = vld [vmem:[%s1150_s1 + $0x68] sm:$0xff]  ;;  %s643_s27 = smul.u32 48, %s939_s29  ;;  %s469_s29 = sshll.u32 %s136_s8, 4  ;;  %s470_s29 = int_to_ptr.vmem [resolvable:$true] %s469_s29 }
  0x16   : > { %v195_v3 = vld [vmem:[%s1150_s1 + $0x178] sm:$0xff]  ;;  %539 = vmatpush3.msra.mxu0 %v163_v2  ;;  %v194_v7 = vld [vmem:[%s1150_s1 + $0x170] sm:$0xff]  ;;  %v193_v11 = vld [vmem:[%s1150_s1 + $0x168] sm:$0xff]  ;;  %s683_s21 = scalar_lea.vmem %s470_s29, 128  ;;  %p690_p0 = scmp.lt.s32.totalorder %s470_s29, %s688_s23 }
  0x17   : > { %574 = vmatpush3.msra.mxu1 %v195_v3  ;;  %540 = vmatprep.subr.mxu0 %v178_v4  ;;  %v176_v12 = vld [vmem:[%s1150_s1 + $0xe0] sm:$0xff]  ;;  %v175_v16 = vld [vmem:[%s1150_s1 + $0xd8] sm:$0xff]  ;;  %v174_v20 = vld [vmem:[%s1150_s1 + $0xd0] sm:$0xff]  ;;  %s993_s28 = scalar_lea.vmem %s1149_s0, %s643_s27  ;;  %s535_s27 = sshll.u32 %s782_s13, 7 }
  0x18   : > { %575 = vmatprep.subr.mxu1 %v210_v5  ;;  %541 = vmatpush3.msra.mxu0 %v162_v6  ;;  %v208_v13 = vld [vmem:[%s1150_s1 + $0x1e0] sm:$0xff]  ;;  %v207_v17 = vld [vmem:[%s1150_s1 + $0x1d8] sm:$0xff]  ;;  %v206_v21 = vld [vmem:[%s1150_s1 + $0x1d0] sm:$0xff]  ;;  %s467_s16 = scalar_lea.hbm %s1151_s2, %s535_s27  ;;  %p684_p11 = scmp.ne.s32.totalorder %s470_s29, %s683_s21 }
  0x19   : > { %576 = vmatpush3.msra.mxu1 %v194_v7  ;;  %542 = vmatprep.subr.mxu0 %v177_v8  ;;  %v160_v14 = vld [vmem:[%s1150_s1 + $0x60] sm:$0xff]  ;;  %v159_v18 = vld [vmem:[%s1150_s1 + $0x58] sm:$0xff]  ;;  %v158_v22 = vld [vmem:[%s1150_s1 + $0x50] sm:$0xff]  ;;  %s689_s13 = scalar_lea.vmem %s688_s23, 256 }
  0x1a   : > { %577 = vmatprep.subr.mxu1 %v209_v9  ;;  %v192_v15 = vld [vmem:[%s1150_s1 + $0x160] sm:$0xff]  ;;  %543 = vmatpush3.msra.mxu0 %v161_v10  ;;  %v191_v19 = vld [vmem:[%s1150_s1 + $0x158] sm:$0xff]  ;;  %v190_v23 = vld [vmem:[%s1150_s1 + $0x150] sm:$0xff]  ;;  %p685_p12 = pnand %p684_p11, %p799_p5  ;;  %p691_p1 = scmp.lt.s32.totalorder %s689_s13, %s683_s21 }
  0x1b   : > { %578 = vmatpush3.msra.mxu1 %v193_v11  ;;  %544 = vmatprep.subr.mxu0 %v176_v12  ;;  %v173_v24 = vld [vmem:[%s1150_s1 + $0xc8] sm:$0xff]  ;;  %v172_v28 = vld [vmem:[%s1150_s1 + $0xc0] sm:$0xff]  ;;  %v171_v32 = vld [vmem:[%s1150_s1 + $0xb8] sm:$0xff] }
  0x1c   : > { %579 = vmatprep.subr.mxu1 %v208_v13  ;;  %545 = vmatpush3.msra.mxu0 %v160_v14  ;;  %v205_v25 = vld [vmem:[%s1150_s1 + $0x1c8] sm:$0xff]  ;;  %v204_v29 = vld [vmem:[%s1150_s1 + $0x1c0] sm:$0xff]  ;;  %v203_v33 = vld [vmem:[%s1150_s1 + $0x1b8] sm:$0xff]  ;;  %p686_p13 = pneg %p685_p12  ;;  %p692_p2 = por %p691_p1, %p690_p0 }
  0x1d   : > { %580 = vmatpush3.msra.mxu1 %v192_v15  ;;  %546 = vmatprep.subr.mxu0 %v175_v16  ;;  %v157_v26 = vld [vmem:[%s1150_s1 + $0x48] sm:$0xff]  ;;  %v156_v30 = vld [vmem:[%s1150_s1 + $0x40] sm:$0xff]  ;;  %v155_v34 = vld [vmem:[%s1150_s1 + $0x38] sm:$0xff] }
  0x1e   : > { %581 = vmatprep.subr.mxu1 %v207_v17  ;;  %547 = vmatpush3.msra.mxu0 %v159_v18  ;;  %v189_v27 = vld [vmem:[%s1150_s1 + $0x148] sm:$0xff]  ;;  %v188_v31 = vld [vmem:[%s1150_s1 + $0x140] sm:$0xff]  ;;  %v187_v35 = vld [vmem:[%s1150_s1 + $0x138] sm:$0xff]  ;;  %p693_p3 = pnand %p692_p2, %p686_p13 }
  0x1f   : > { %582 = vmatpush3.msra.mxu1 %v191_v19  ;;  %548 = vmatprep.subr.mxu0 %v174_v20  ;;  %v170_v36 = vld [vmem:[%s1150_s1 + $0xb0] sm:$0xff]  ;;  %v169_v40 = vld [vmem:[%s1150_s1 + $0xa8] sm:$0xff]  ;;  %v168_v44 = vld [vmem:[%s1150_s1 + $0xa0] sm:$0xff] }
  0x20   : > { %583 = vmatprep.subr.mxu1 %v206_v21  ;;  %549 = vmatpush3.msra.mxu0 %v158_v22  ;;  %v202_v37 = vld [vmem:[%s1150_s1 + $0x1b0] sm:$0xff]  ;;  %v201_v41 = vld [vmem:[%s1150_s1 + $0x1a8] sm:$0xff]  ;;  %v200_v45 = vld [vmem:[%s1150_s1 + $0x1a0] sm:$0xff] }
  0x21   : > { %584 = vmatpush3.msra.mxu1 %v190_v23  ;;  %550 = vmatprep.subr.mxu0 %v173_v24  ;;  %v154_v38 = vld [vmem:[%s1150_s1 + $0x30] sm:$0xff]  ;;  %v153_v42 = vld [vmem:[%s1150_s1 + $0x28] sm:$0xff]  ;;  %v152_v46 = vld [vmem:[%s1150_s1 + $0x20] sm:$0xff] }
  0x22   : > { %585 = vmatprep.subr.mxu1 %v205_v25  ;;  %551 = vmatpush3.msra.mxu0 %v157_v26  ;;  %v186_v39 = vld [vmem:[%s1150_s1 + $0x130] sm:$0xff]  ;;  %v185_v43 = vld [vmem:[%s1150_s1 + $0x128] sm:$0xff]  ;;  %v184_v47 = vld [vmem:[%s1150_s1 + $0x120] sm:$0xff] }
  0x23   : > { %586 = vmatpush3.msra.mxu1 %v189_v27  ;;  %552 = vmatprep.subr.mxu0 %v172_v28  ;;  %v167_v48 = vld [vmem:[%s1150_s1 + $0x98] sm:$0xff]  ;;  %v166_v52 = vld [vmem:[%s1150_s1 + $0x90] sm:$0xff]  ;;  %v165_v56 = vld [vmem:[%s1150_s1 + $0x88] sm:$0xff] }
  0x24   : > { %587 = vmatprep.subr.mxu1 %v204_v29  ;;  %553 = vmatpush3.msra.mxu0 %v156_v30  ;;  %v199_v49 = vld [vmem:[%s1150_s1 + $0x198] sm:$0xff]  ;;  %v198_v53 = vld [vmem:[%s1150_s1 + $0x190] sm:$0xff]  ;;  %v197_v57 = vld [vmem:[%s1150_s1 + $0x188] sm:$0xff] }
  0x25   : > { %588 = vmatpush3.msra.mxu1 %v188_v31  ;;  %554 = vmatprep.subr.mxu0 %v171_v32  ;;  %v151_v50 = vld [vmem:[%s1150_s1 + $0x18] sm:$0xff]  ;;  %v150_v54 = vld [vmem:[%s1150_s1 + $0x10] sm:$0xff]  ;;  %v149_v58 = vld [vmem:[%s1150_s1 + $0x8] sm:$0xff] }
  0x26   : > { %589 = vmatprep.subr.mxu1 %v203_v33  ;;  %555 = vmatpush3.msra.mxu0 %v155_v34  ;;  %v183_v51 = vld [vmem:[%s1150_s1 + $0x118] sm:$0xff]  ;;  %v182_v55 = vld [vmem:[%s1150_s1 + $0x110] sm:$0xff]  ;;  %v181_v59 = vld [vmem:[%s1150_s1 + $0x108] sm:$0xff] }
  0x27   : > { %590 = vmatpush3.msra.mxu1 %v187_v35  ;;  %556 = vmatprep.subr.mxu0 %v170_v36  ;;  %v164_v60 = vld [vmem:[%s1150_s1 + $0x80] sm:$0xff]  ;;  %v143_v63 = vld [vmem:[%s993_s28 + $0x8] sm:$0xff]  ;;  %v145_v1 = vld [vmem:[%s993_s28 + $0x18] sm:$0xff] }
  0x28   : > { %591 = vmatprep.subr.mxu1 %v202_v37  ;;  %557 = vmatpush3.msra.mxu0 %v154_v38  ;;  %v196_v61 = vld [vmem:[%s1150_s1 + $0x180] sm:$0xff]  ;;  %v144_v3 = vld [vmem:[%s993_s28 + $0x10] sm:$0xff]  ;;  %v243_v4 = vld [vmem:[%s1150_s1 + $0x2f8] sm:$0xff] }
  0x29   : > { %592 = vmatpush3.msra.mxu1 %v186_v39  ;;  %558 = vmatprep.subr.mxu0 %v169_v40  ;;  %v148_v62 = vld [vmem:[%s1150_s1] sm:$0xff]  ;;  %v227_v5 = vld [vmem:[%s1150_s1 + $0x278] sm:$0xff]  ;;  %v147_v6 = vld [vmem:[%s993_s28 + $0x28] sm:$0xff] }
  0x2a   : > { %593 = vmatprep.subr.mxu1 %v201_v41  ;;  %559 = vmatpush3.msra.mxu0 %v153_v42  ;;  %v180_v0 = vld [vmem:[%s1150_s1 + $0x100] sm:$0xff]  ;;  %v242_v7 = vld [vmem:[%s1150_s1 + $0x2f0] sm:$0xff]  ;;  %v241_v9 = vld [vmem:[%s1150_s1 + $0x2e8] sm:$0xff] }
  0x2b   : > { %594 = vmatpush3.msra.mxu1 %v185_v43  ;;  %560 = vmatprep.subr.mxu0 %v168_v44  ;;  %v142_v2 = vld [vmem:[%s993_s28] sm:$0xff]  ;;  %v226_v8 = vld [vmem:[%s1150_s1 + $0x270] sm:$0xff]  ;;  %v225_v10 = vld [vmem:[%s1150_s1 + $0x268] sm:$0xff] }
  0x2c   : > { %595 = vmatprep.subr.mxu1 %v200_v45  ;;  %561 = vmatpush3.msra.mxu0 %v152_v46  ;;  %v240_v11 = vld [vmem:[%s1150_s1 + $0x2e0] sm:$0xff]  ;;  %v239_v13 = vld [vmem:[%s1150_s1 + $0x2d8] sm:$0xff]  ;;  %v238_v15 = vld [vmem:[%s1150_s1 + $0x2d0] sm:$0xff] }
  0x2d   : > { %596 = vmatpush3.msra.mxu1 %v184_v47  ;;  %562 = vmatprep.subr.mxu0 %v167_v48  ;;  %v224_v12 = vld [vmem:[%s1150_s1 + $0x260] sm:$0xff]  ;;  %v223_v14 = vld [vmem:[%s1150_s1 + $0x258] sm:$0xff]  ;;  %v222_v16 = vld [vmem:[%s1150_s1 + $0x250] sm:$0xff] }
  0x2e   : > { %597 = vmatprep.subr.mxu1 %v199_v49  ;;  %563 = vmatpush3.msra.mxu0 %v151_v50  ;;  %v237_v17 = vld [vmem:[%s1150_s1 + $0x2c8] sm:$0xff]  ;;  %v236_v19 = vld [vmem:[%s1150_s1 + $0x2c0] sm:$0xff]  ;;  %v235_v21 = vld [vmem:[%s1150_s1 + $0x2b8] sm:$0xff] }
  0x2f   : > { %598 = vmatpush3.msra.mxu1 %v183_v51  ;;  %564 = vmatprep.subr.mxu0 %v166_v52  ;;  %v221_v18 = vld [vmem:[%s1150_s1 + $0x248] sm:$0xff]  ;;  %v220_v20 = vld [vmem:[%s1150_s1 + $0x240] sm:$0xff]  ;;  %v219_v22 = vld [vmem:[%s1150_s1 + $0x238] sm:$0xff] }
  0x30   : > { %599 = vmatprep.subr.mxu1 %v198_v53  ;;  %565 = vmatpush3.msra.mxu0 %v150_v54  ;;  %v234_v23 = vld [vmem:[%s1150_s1 + $0x2b0] sm:$0xff]  ;;  %v233_v25 = vld [vmem:[%s1150_s1 + $0x2a8] sm:$0xff]  ;;  %v232_v27 = vld [vmem:[%s1150_s1 + $0x2a0] sm:$0xff] }
  0x31   : > { %600 = vmatpush3.msra.mxu1 %v182_v55  ;;  %566 = vmatprep.subr.mxu0 %v165_v56  ;;  %v218_v24 = vld [vmem:[%s1150_s1 + $0x230] sm:$0xff]  ;;  %v217_v26 = vld [vmem:[%s1150_s1 + $0x228] sm:$0xff]  ;;  %v216_v28 = vld [vmem:[%s1150_s1 + $0x220] sm:$0xff] }
  0x32   : > { %601 = vmatprep.subr.mxu1 %v197_v57  ;;  %567 = vmatpush3.msra.mxu0 %v149_v58  ;;  %v231_v29 = vld [vmem:[%s1150_s1 + $0x298] sm:$0xff]  ;;  %v230_v31 = vld [vmem:[%s1150_s1 + $0x290] sm:$0xff]  ;;  %v229_v33 = vld [vmem:[%s1150_s1 + $0x288] sm:$0xff] }
  0x33   : > { %602 = vmatpush3.msra.mxu1 %v181_v59  ;;  %568 = vmatprep.subr.mxu0 %v164_v60  ;;  %v215_v30 = vld [vmem:[%s1150_s1 + $0x218] sm:$0xff]  ;;  %v214_v32 = vld [vmem:[%s1150_s1 + $0x210] sm:$0xff]  ;;  %v213_v34 = vld [vmem:[%s1150_s1 + $0x208] sm:$0xff] }
  0x34   : > { %603 = vmatprep.subr.mxu1 %v196_v61  ;;  %569 = vmatpush3.msra.mxu0 %v148_v62  ;;  %v228_v35 = vld [vmem:[%s1150_s1 + $0x280] sm:$0xff] }
  0x35   : > { %308 = vmatprep.mubr.f32.mxu0 %v143_v63  ;;  %604 = vmatpush3.msra.mxu1 %v180_v0  ;;  %v212_v36 = vld [vmem:[%s1150_s1 + $0x200] sm:$0xff] }
  0x36   : > { %378 = vmatprep.mubr.f32.mxu1 %v145_v1  ;;  %309 = vmatmul.mubr.f32.vlgmr.msra.gmra.mxu0 %v142_v2  ;;  %v146_v37 = vld [vmem:[%s993_s28 + $0x20] sm:$0xff] }
  0x37   : > { %379 = vmatmul.mubr.f32.vlgmr.msra.gmra.mxu1 %v144_v3  ;;  %608 = vmatprep.subr.mxu0 %v243_v4 }
  0x38   : > { %448 = vmatprep.mubr.f32.mxu0 %v147_v6  ;;  %609 = vmatpush3.msra.mxu0 %v227_v5 }
  0x39   : > { %610 = vmatprep.subr.mxu0 %v242_v7 }
  0x3a   : > { %611 = vmatpush3.msra.mxu0 %v226_v8 }
  0x3b   : > { %612 = vmatprep.subr.mxu0 %v241_v9 }
  0x3c   : > { %613 = vmatpush3.msra.mxu0 %v225_v10 }
  0x3d   : > { %614 = vmatprep.subr.mxu0 %v240_v11 }
  0x3e   : > { %615 = vmatpush3.msra.mxu0 %v224_v12 }
  0x3f   : > { %616 = vmatprep.subr.mxu0 %v239_v13 }
  0x40   : > { %617 = vmatpush3.msra.mxu0 %v223_v14 }
  0x41   : > { %618 = vmatprep.subr.mxu0 %v238_v15 }
  0x42   : > { %619 = vmatpush3.msra.mxu0 %v222_v16 }
  0x43   : > { %620 = vmatprep.subr.mxu0 %v237_v17 }
  0x44   : > { %621 = vmatpush3.msra.mxu0 %v221_v18 }
  0x45   : > { %622 = vmatprep.subr.mxu0 %v236_v19 }
  0x46   : > { %623 = vmatpush3.msra.mxu0 %v220_v20 }
  0x47   : > { %624 = vmatprep.subr.mxu0 %v235_v21 }
  0x48   : > { %625 = vmatpush3.msra.mxu0 %v219_v22 }
  0x49   : > { %626 = vmatprep.subr.mxu0 %v234_v23 }
  0x4a   : > { %627 = vmatpush3.msra.mxu0 %v218_v24 }
  0x4b   : > { %628 = vmatprep.subr.mxu0 %v233_v25 }
  0x4c   : > { %629 = vmatpush3.msra.mxu0 %v217_v26 }
  0x4d   : > { %630 = vmatprep.subr.mxu0 %v232_v27 }
  0x4e   : > { %631 = vmatpush3.msra.mxu0 %v216_v28 }
  0x4f   : > { %632 = vmatprep.subr.mxu0 %v231_v29 }
  0x50   : > { %633 = vmatpush3.msra.mxu0 %v215_v30 }
  0x51   : > { %634 = vmatprep.subr.mxu0 %v230_v31 }
  0x52   : > { %635 = vmatpush3.msra.mxu0 %v214_v32 }
  0x53   : > { %636 = vmatprep.subr.mxu0 %v229_v33 }
  0x54   : > { %637 = vmatpush3.msra.mxu0 %v213_v34 }
  0x55   : > { %638 = vmatprep.subr.mxu0 %v228_v35 }
  0x56   : > { %639 = vmatpush3.msra.mxu0 %v212_v36 }
  0x57   : > { %449 = vmatmul.mubr.f32.vlgmr.msra.gmra.mxu0 %v146_v37 }
  0xf6   : > { %v570_v38 = vpop.f32.mrf.mxu0 }
  0xf7   : > { %v605_v39 = vpop.f32.mrf.mxu1 }
  0xf8   : > { %v571_v40 = vpop.f32.mrf.mxu0 }
  0xf9   : > { %v606_v41 = vpop.f32.mrf.mxu1  ;;  %v572_v42 = vadd.f32 %v571_v40, %v570_v38 }
  0xfa   : > { %v607_v43 = vadd.f32 %v606_v41, %v605_v39 }
  0xfc   : > { %v381_v46 = vadd.f32 %v607_v43, %v572_v42 }
 0x117   : > { %v640_v44 = vpop.f32.mrf.mxu0 }
 0x119   : > { %v641_v45 = vpop.f32.mrf.mxu0 }
 0x11a   : > { %v642_v47 = vadd.f32 %v641_v45, %v640_v44 }
 0x11c   : > { %v451_v48 = vadd.f32 %v642_v47, %v381_v46 }
 0x11e   : > { %454 = vst [vmem:[%s136_s8] sm:$0xff] %v451_v48 }
 0x11f   : > { %696 = shalt.err (!%p693_p3)
}
 0x120   : > { %s697_s24 = scalar_lea.hbm %s467_s16, 128  ;;  %s701_s30 = scalar_lea.hbm %s1151_s2, 256 }
 0x121   : > { %p698_p4 = scmp.ne.s32.totalorder %s467_s16, %s697_s24  ;;  %p702_p9 = scmp.lt.s32.totalorder %s467_s16, %s1151_s2 }
 0x122   : > { %p703_p10 = scmp.lt.s32.totalorder %s701_s30, %s697_s24 }
 0x123   : > { %p699_p7 = pnand %p698_p4, %p799_p5 }
 0x124   : > { %p704_p11 = por %p703_p10, %p702_p9 }
 0x125   : > { %p700_p8 = pneg %p699_p7 }
 0x127   : > { %p705_p12 = pnand %p704_p11, %p700_p8 }
 0x129   : > { %708 = shalt.err (!%p705_p12)
}
 0x12a   : > { %644 = dma.vmem_to_hbm [thread:$0]  (%p799_p5), %s470_s29, 128, %s467_s16, %s456_s17  }
 0x12b PF: > { %p650_p13 = scmp.ge.s32.totalorder %s743_s12, 2  ;;  %s481_s5 = sand.u32 1, %s731_s9  }
 0x12c   : > { %s482_s6 = scalar_lea.sflag [#allocation3], %s481_s5 }
 0x12d   : > { %p647_p0 = pnand %p650_p13, %p803_p6 }
 0x12f   : > { %p648_p1 = pneg %p647_p0 }
 0x131   : > { %726 = dma.done.wait (%p648_p1), %s482_s6, 128  }
 0x132   : > { %728 = vsyncadd (%p648_p1), %s482_s6, 4294967168  ;;  %p12_p2 = scmp.ge.s32.totalorder %s786_s15, 4   ;;  %s1154_s9 = smov %s735_s10 }
 0x133   : > { %s1155_s10 = smov %s739_s11  ;;  %s1156_s11 = smov %s797_s18 }
 0x134   : > { %s1157_s12 = smov %s786_s15  ;;  %14 = sbr.rel (!%p12_p2) target bundleno = 3 (0x3), region = 63 }
 0x139   :  { %487 = vsyncpa [#allocation3], 1 }
 0x13a   :  { %489 = vsyncpa [#allocation3 + $0x1], 1 }

</bundles_post_ra>
